<compile_context>
chip_gen: v7x
topology: tpu7x:2x2x1
jax: 0.10.0
libtpu: 0.0.40
codegen_flags: <defaults>
</compile_context>

<pallas_src>
import jax
import jax.numpy as jnp
from jax import lax
from jax.experimental import pallas as pl
from jax.experimental.pallas import tpu as pltpu


# ----------------------------- Pallas kernel ------------------------------- #

def _make_seq2seq_kernel(seq, batch_pad, hidden):
    """Fused encoder->decoder->fc kernel (whole problem resident in VMEM)."""

    def kernel(x_ref, wcomb_ref, bcomb_ref, enc_whh_ref, dec_whh_ref,
               wfc_ref, bfc_ref, out_ref, rout_ref):
        # Fused hoisted input projection for BOTH RNNs: one bf16 MXU call
        # (f32 accumulate).  Columns [0:H) = encoder, [H:2H) = decoder.
        xw = (jnp.dot(x_ref[...], wcomb_ref[...],
                      preferred_element_type=jnp.float32)
              + bcomb_ref[...])                         # (seq*B, 2H) f32
        xw_enc = xw[:, :hidden]
        xw_dec = xw[:, hidden:]

        whh_enc = enc_whh_ref[...]                      # (H, H) bf16
        whh_dec = dec_whh_ref[...]

        # Encoder recurrence: only h_n is needed.  h0 == 0, so step 0 is just
        # tanh(xw_enc[0:B]) (drops one matmul from the serial chain).  Each
        # per-step block is exactly one sublane group -> tile-aligned slices.
        h = jnp.tanh(xw_enc[0:batch_pad, :])
        h_bf = h.astype(jnp.bfloat16)
        for t in range(1, seq):
            hh = jnp.dot(h_bf, whh_enc, preferred_element_type=jnp.float32)
            h = jnp.tanh(xw_enc[t * batch_pad:(t + 1) * batch_pad, :] + hh)
            h_bf = h.astype(jnp.bfloat16)

        # Decoder recurrence, initialized from the encoder h_n (carried in
        # vregs, never leaves the chip).  Hidden states stream into a VMEM
        # scratch buffer with tile-aligned f32 row-block stores (no concat,
        # bounded vreg pressure).
        for t in range(seq):
            hh = jnp.dot(h_bf, whh_dec, preferred_element_type=jnp.float32)
            h = jnp.tanh(xw_dec[t * batch_pad:(t + 1) * batch_pad, :] + hh)
            rout_ref[t * batch_pad:(t + 1) * batch_pad, :] = h
            h_bf = h.astype(jnp.bfloat16)

        # Single hoisted fc matmul + scalar bias from SMEM; one store / one
        # HBM writeback for the (tiny) output.
        out_ref[...] = (jnp.dot(rout_ref[...].astype(jnp.bfloat16),
                                wfc_ref[...],
                                preferred_element_type=jnp.float32)
                        + bfc_ref[0, 0])                # (seq*B, 1)

    return kernel


# ------------------------------- wrapper ----------------------------------- #

def seq2seq_forward(x, target, batch_size, params):
    """Mirrors Seq2seq.forward: out = decoder(x, encoder(x)[1])."""
    del target, batch_size  # torch only uses them for an overwritten zeros buffer
    seq, batch, insz = x.shape
    hidden = params["enc_whh_t"].shape[0]

    # Pad batch to a full sublane group (8) so every per-timestep row block
    # in the kernel is (8,128)-tile aligned; padding dropped after the call.
    batch_pad = max(8, ((batch + 7) // 8) * 8)
    if batch_pad != batch:
        x = jnp.pad(x, ((0, 0), (0, batch_pad - batch), (0, 0)))
    x2 = x.reshape(seq * batch_pad, insz)               # time-major flatten

    # Fuse the two input-projection weights (one MXU call in-kernel) and
    # pre-sum the RNN biases (b_ih + b_hh) once.
    w_comb = jnp.concatenate([params["enc_wih_t"], params["dec_wih_t"]], axis=1)
    b_comb = jnp.concatenate([params["enc_bih"] + params["enc_bhh"],
                              params["dec_bih"] + params["dec_bhh"]], axis=1)

    vmem = pl.BlockSpec(memory_space=pltpu.MemorySpace.VMEM)
    smem = pl.BlockSpec(memory_space=pltpu.MemorySpace.SMEM)

    out2d = pl.pallas_call(
        _make_seq2seq_kernel(seq, batch_pad, hidden),
        out_shape=jax.ShapeDtypeStruct((seq * batch_pad, 1), jnp.float32),
        in_specs=[vmem, vmem, vmem, vmem, vmem, vmem, smem],
        out_specs=vmem,
        scratch_shapes=[pltpu.VMEM((seq * batch_pad, hidden), jnp.float32)],
    )(x2.astype(jnp.bfloat16),                          # matmul operands in bf16
      w_comb.astype(jnp.bfloat16),
      b_comb.astype(jnp.float32),
      params["enc_whh_t"].astype(jnp.bfloat16),
      params["dec_whh_t"].astype(jnp.bfloat16),
      params["dec_wfc"].astype(jnp.bfloat16),
      params["dec_bfc"].reshape(1, 1).astype(jnp.float32))

    # Drop the batch padding and restore (seq, batch, 1).
    return out2d.reshape(seq, batch_pad, 1)[:, :batch, :]


# --------------------------- pure-JAX references ---------------------------- #

def _rnn_ref(xs, h0, wih_t, whh_t, b, cast):
    def step(h, x_t):
        pre = (jnp.dot(cast(x_t), cast(wih_t), preferred_element_type=jnp.float32)
               + b
               + jnp.dot(cast(h), cast(whh_t), preferred_element_type=jnp.float32))
        h_new = jnp.tanh(pre)
        return h_new, h_new
    h_last, hs = lax.scan(step, h0, xs)
    return hs, h_last


def _ref_forward(x, params, *, bf16_matmuls):
    cast = (lambda a: a.astype(jnp.bfloat16)) if bf16_matmuls else (lambda a: a)
    seq, batch, _ = x.shape
    hidden = params["enc_whh_t"].shape[0]
    h0 = jnp.zeros((batch, hidden), jnp.float32)
    _, h_n = _rnn_ref(x, h0, params["enc_wih_t"], params["enc_whh_t"],
                      params["enc_bih"] + params["enc_bhh"], cast)
    r_out, _ = _rnn_ref(x, h_n, params["dec_wih_t"], params["dec_whh_t"],
                        params["dec_bih"] + params["dec_bhh"], cast)
    r2 = r_out.reshape(seq * batch, hidden)
    out = (jnp.dot(cast(r2), cast(params["dec_wfc"]),
                   preferred_element_type=jnp.float32)
           + params["dec_bfc"])
    return out.reshape(seq, batch, 1)


# ---------------------------------- main ------------------------------------ #

if __name__ == "__main__":
    SEQ, BATCH, INPUT, HIDDEN = 8, 4, 16, 32

    key = jax.random.PRNGKey(0)
    ks = jax.random.split(key, 12)
    s = 1.0 / jnp.sqrt(HIDDEN)
    u = lambda k, shape: jax.random.uniform(k, shape, jnp.float32, -s, s)

    params = {
        # encoder nn.RNN(INPUT, HIDDEN): weights stored pre-transposed (in, hid)
        "enc_wih_t": u(ks[0], (INPUT, HIDDEN)),
        "enc_whh_t": u(ks[1], (HIDDEN, HIDDEN)),
        "enc_bih":   u(ks[2], (1, HIDDEN)),
        "enc_bhh":   u(ks[3], (1, HIDDEN)),
        # decoder nn.RNN(INPUT, HIDDEN) + nn.Linear(HIDDEN, 1)
        "dec_wih_t": u(ks[4], (INPUT, HIDDEN)),
        "dec_whh_t": u(ks[5], (HIDDEN, HIDDEN)),
        "dec_bih":   u(ks[6], (1, HIDDEN)),
        "dec_bhh":   u(ks[7], (1, HIDDEN)),
        "dec_wfc":   u(ks[8], (HIDDEN, 1)),
        "dec_bfc":   u(ks[9], (1, 1)),
    }

    x = jax.random.normal(ks[10], (SEQ, BATCH, INPUT), jnp.float32)
    target = jax.random.normal(ks[11], (SEQ, BATCH, 1), jnp.float32)

    out = seq2seq_forward(x, target, BATCH, params)
    out = jax.block_until_ready(out)
    assert out.shape == (SEQ, BATCH, 1)

    # Tight check vs a reference that mirrors the kernel's bf16-at-the-matmul /
    # f32-accumulate numerics, plus a loose sanity check vs pure f32.
    ref_bf16 = _ref_forward(x, params, bf16_matmuls=True)
    ref_f32 = _ref_forward(x, params, bf16_matmuls=False)
    assert jnp.allclose(out, ref_bf16, atol=5e-3, rtol=5e-3), (
        float(jnp.max(jnp.abs(out - ref_bf16))))
    assert jnp.allclose(out, ref_f32, atol=1e-1, rtol=1e-1), (
        float(jnp.max(jnp.abs(out - ref_f32))))

    print("KERNEL_OK")
</pallas_src>

<mosaic_0001>
module attributes {stable_mosaic.version = 11 : i64} {
  func.func @kernel(%arg0: memref<64x16xbf16, #tpu.memory_space<vmem>>, %arg1: memref<16x64xbf16, #tpu.memory_space<vmem>>, %arg2: memref<1x64xf32, #tpu.memory_space<vmem>>, %arg3: memref<32x32xbf16, #tpu.memory_space<vmem>>, %arg4: memref<32x32xbf16, #tpu.memory_space<vmem>>, %arg5: memref<32x1xbf16, #tpu.memory_space<vmem>>, %arg6: memref<1x1xf32, #tpu.memory_space<smem>>, %arg7: memref<64x1xf32, #tpu.memory_space<vmem>>, %arg8: memref<64x32xf32, #tpu.memory_space<vmem>>) attributes {dimension_semantics = [], scalar_prefetch = 0 : i64, scratch_operands = 1 : i64, tpu.core_type = #tpu.core_type<tc>} {
    %c0 = arith.constant 0 : index
    %c0_0 = arith.constant 0 : index
    %0 = vector.load %arg0[%c0, %c0_0] : memref<64x16xbf16, #tpu.memory_space<vmem>>, vector<64x16xbf16>
    %c0_1 = arith.constant 0 : index
    %c0_2 = arith.constant 0 : index
    %1 = vector.load %arg1[%c0_1, %c0_2] : memref<16x64xbf16, #tpu.memory_space<vmem>>, vector<16x64xbf16>
    %cst = arith.constant dense<0.000000e+00> : vector<64x64xf32>
    %2 = tpu.matmul %0, %1, %cst {dimension_numbers = #tpu.dot_dimension_numbers<[1], [0], [0], [1], [0, 0, 1, 1], [], []>} : vector<64x16xbf16>, vector<16x64xbf16>, vector<64x64xf32> -> vector<64x64xf32>
    %c0_3 = arith.constant 0 : index
    %c0_4 = arith.constant 0 : index
    %3 = vector.load %arg2[%c0_3, %c0_4] : memref<1x64xf32, #tpu.memory_space<vmem>>, vector<1x64xf32>
    %4 = vector.broadcast %3 : vector<1x64xf32> to vector<64x64xf32>
    %5 = arith.addf %2, %4 : vector<64x64xf32>
    %6 = vector.extract_strided_slice %5 {offsets = [0, 0], sizes = [64, 32], strides = [1, 1]} : vector<64x64xf32> to vector<64x32xf32>
    %7 = vector.extract_strided_slice %5 {offsets = [0, 32], sizes = [64, 32], strides = [1, 1]} : vector<64x64xf32> to vector<64x32xf32>
    %c0_5 = arith.constant 0 : index
    %c0_6 = arith.constant 0 : index
    %8 = vector.load %arg3[%c0_5, %c0_6] : memref<32x32xbf16, #tpu.memory_space<vmem>>, vector<32x32xbf16>
    %c0_7 = arith.constant 0 : index
    %c0_8 = arith.constant 0 : index
    %9 = vector.load %arg4[%c0_7, %c0_8] : memref<32x32xbf16, #tpu.memory_space<vmem>>, vector<32x32xbf16>
    %10 = vector.extract_strided_slice %6 {offsets = [0, 0], sizes = [8, 32], strides = [1, 1]} : vector<64x32xf32> to vector<8x32xf32>
    %11 = math.tanh %10 : vector<8x32xf32>
    %12 = arith.truncf %11 : vector<8x32xf32> to vector<8x32xbf16>
    %cst_9 = arith.constant dense<0.000000e+00> : vector<8x32xf32>
    %13 = tpu.matmul %12, %8, %cst_9 {dimension_numbers = #tpu.dot_dimension_numbers<[1], [0], [0], [1], [0, 0, 1, 1], [], []>} : vector<8x32xbf16>, vector<32x32xbf16>, vector<8x32xf32> -> vector<8x32xf32>
    %14 = vector.extract_strided_slice %6 {offsets = [8, 0], sizes = [8, 32], strides = [1, 1]} : vector<64x32xf32> to vector<8x32xf32>
    %15 = arith.addf %14, %13 : vector<8x32xf32>
    %16 = math.tanh %15 : vector<8x32xf32>
    %17 = arith.truncf %16 : vector<8x32xf32> to vector<8x32xbf16>
    %cst_10 = arith.constant dense<0.000000e+00> : vector<8x32xf32>
    %18 = tpu.matmul %17, %8, %cst_10 {dimension_numbers = #tpu.dot_dimension_numbers<[1], [0], [0], [1], [0, 0, 1, 1], [], []>} : vector<8x32xbf16>, vector<32x32xbf16>, vector<8x32xf32> -> vector<8x32xf32>
    %19 = vector.extract_strided_slice %6 {offsets = [16, 0], sizes = [8, 32], strides = [1, 1]} : vector<64x32xf32> to vector<8x32xf32>
    %20 = arith.addf %19, %18 : vector<8x32xf32>
    %21 = math.tanh %20 : vector<8x32xf32>
    %22 = arith.truncf %21 : vector<8x32xf32> to vector<8x32xbf16>
    %cst_11 = arith.constant dense<0.000000e+00> : vector<8x32xf32>
    %23 = tpu.matmul %22, %8, %cst_11 {dimension_numbers = #tpu.dot_dimension_numbers<[1], [0], [0], [1], [0, 0, 1, 1], [], []>} : vector<8x32xbf16>, vector<32x32xbf16>, vector<8x32xf32> -> vector<8x32xf32>
    %24 = vector.extract_strided_slice %6 {offsets = [24, 0], sizes = [8, 32], strides = [1, 1]} : vector<64x32xf32> to vector<8x32xf32>
    %25 = arith.addf %24, %23 : vector<8x32xf32>
    %26 = math.tanh %25 : vector<8x32xf32>
    %27 = arith.truncf %26 : vector<8x32xf32> to vector<8x32xbf16>
    %cst_12 = arith.constant dense<0.000000e+00> : vector<8x32xf32>
    %28 = tpu.matmul %27, %8, %cst_12 {dimension_numbers = #tpu.dot_dimension_numbers<[1], [0], [0], [1], [0, 0, 1, 1], [], []>} : vector<8x32xbf16>, vector<32x32xbf16>, vector<8x32xf32> -> vector<8x32xf32>
    %29 = vector.extract_strided_slice %6 {offsets = [32, 0], sizes = [8, 32], strides = [1, 1]} : vector<64x32xf32> to vector<8x32xf32>
    %30 = arith.addf %29, %28 : vector<8x32xf32>
    %31 = math.tanh %30 : vector<8x32xf32>
    %32 = arith.truncf %31 : vector<8x32xf32> to vector<8x32xbf16>
    %cst_13 = arith.constant dense<0.000000e+00> : vector<8x32xf32>
    %33 = tpu.matmul %32, %8, %cst_13 {dimension_numbers = #tpu.dot_dimension_numbers<[1], [0], [0], [1], [0, 0, 1, 1], [], []>} : vector<8x32xbf16>, vector<32x32xbf16>, vector<8x32xf32> -> vector<8x32xf32>
    %34 = vector.extract_strided_slice %6 {offsets = [40, 0], sizes = [8, 32], strides = [1, 1]} : vector<64x32xf32> to vector<8x32xf32>
    %35 = arith.addf %34, %33 : vector<8x32xf32>
    %36 = math.tanh %35 : vector<8x32xf32>
    %37 = arith.truncf %36 : vector<8x32xf32> to vector<8x32xbf16>
    %cst_14 = arith.constant dense<0.000000e+00> : vector<8x32xf32>
    %38 = tpu.matmul %37, %8, %cst_14 {dimension_numbers = #tpu.dot_dimension_numbers<[1], [0], [0], [1], [0, 0, 1, 1], [], []>} : vector<8x32xbf16>, vector<32x32xbf16>, vector<8x32xf32> -> vector<8x32xf32>
    %39 = vector.extract_strided_slice %6 {offsets = [48, 0], sizes = [8, 32], strides = [1, 1]} : vector<64x32xf32> to vector<8x32xf32>
    %40 = arith.addf %39, %38 : vector<8x32xf32>
    %41 = math.tanh %40 : vector<8x32xf32>
    %42 = arith.truncf %41 : vector<8x32xf32> to vector<8x32xbf16>
    %cst_15 = arith.constant dense<0.000000e+00> : vector<8x32xf32>
    %43 = tpu.matmul %42, %8, %cst_15 {dimension_numbers = #tpu.dot_dimension_numbers<[1], [0], [0], [1], [0, 0, 1, 1], [], []>} : vector<8x32xbf16>, vector<32x32xbf16>, vector<8x32xf32> -> vector<8x32xf32>
    %44 = vector.extract_strided_slice %6 {offsets = [56, 0], sizes = [8, 32], strides = [1, 1]} : vector<64x32xf32> to vector<8x32xf32>
    %45 = arith.addf %44, %43 : vector<8x32xf32>
    %46 = math.tanh %45 : vector<8x32xf32>
    %47 = arith.truncf %46 : vector<8x32xf32> to vector<8x32xbf16>
    %cst_16 = arith.constant dense<0.000000e+00> : vector<8x32xf32>
    %48 = tpu.matmul %47, %9, %cst_16 {dimension_numbers = #tpu.dot_dimension_numbers<[1], [0], [0], [1], [0, 0, 1, 1], [], []>} : vector<8x32xbf16>, vector<32x32xbf16>, vector<8x32xf32> -> vector<8x32xf32>
    %49 = vector.extract_strided_slice %7 {offsets = [0, 0], sizes = [8, 32], strides = [1, 1]} : vector<64x32xf32> to vector<8x32xf32>
    %50 = arith.addf %49, %48 : vector<8x32xf32>
    %51 = math.tanh %50 : vector<8x32xf32>
    %c0_17 = arith.constant 0 : index
    %c0_18 = arith.constant 0 : index
    %52 = vector.load %arg8[%c0_17, %c0_18] : memref<64x32xf32, #tpu.memory_space<vmem>>, vector<8x32xf32>
    tpu.vector_store %arg8[%c0_17, %c0_18], %51 {strides = array<i32>} : memref<64x32xf32, #tpu.memory_space<vmem>>, vector<8x32xf32>,
    %53 = arith.truncf %51 : vector<8x32xf32> to vector<8x32xbf16>
    %cst_19 = arith.constant dense<0.000000e+00> : vector<8x32xf32>
    %54 = tpu.matmul %53, %9, %cst_19 {dimension_numbers = #tpu.dot_dimension_numbers<[1], [0], [0], [1], [0, 0, 1, 1], [], []>} : vector<8x32xbf16>, vector<32x32xbf16>, vector<8x32xf32> -> vector<8x32xf32>
    %55 = vector.extract_strided_slice %7 {offsets = [8, 0], sizes = [8, 32], strides = [1, 1]} : vector<64x32xf32> to vector<8x32xf32>
    %56 = arith.addf %55, %54 : vector<8x32xf32>
    %57 = math.tanh %56 : vector<8x32xf32>
    %c8 = arith.constant 8 : index
    %c0_20 = arith.constant 0 : index
    %58 = vector.load %arg8[%c8, %c0_20] : memref<64x32xf32, #tpu.memory_space<vmem>>, vector<8x32xf32>
    tpu.vector_store %arg8[%c8, %c0_20], %57 {strides = array<i32>} : memref<64x32xf32, #tpu.memory_space<vmem>>, vector<8x32xf32>,
    %59 = arith.truncf %57 : vector<8x32xf32> to vector<8x32xbf16>
    %cst_21 = arith.constant dense<0.000000e+00> : vector<8x32xf32>
    %60 = tpu.matmul %59, %9, %cst_21 {dimension_numbers = #tpu.dot_dimension_numbers<[1], [0], [0], [1], [0, 0, 1, 1], [], []>} : vector<8x32xbf16>, vector<32x32xbf16>, vector<8x32xf32> -> vector<8x32xf32>
    %61 = vector.extract_strided_slice %7 {offsets = [16, 0], sizes = [8, 32], strides = [1, 1]} : vector<64x32xf32> to vector<8x32xf32>
    %62 = arith.addf %61, %60 : vector<8x32xf32>
    %63 = math.tanh %62 : vector<8x32xf32>
    %c16 = arith.constant 16 : index
    %c0_22 = arith.constant 0 : index
    %64 = vector.load %arg8[%c16, %c0_22] : memref<64x32xf32, #tpu.memory_space<vmem>>, vector<8x32xf32>
    tpu.vector_store %arg8[%c16, %c0_22], %63 {strides = array<i32>} : memref<64x32xf32, #tpu.memory_space<vmem>>, vector<8x32xf32>,
    %65 = arith.truncf %63 : vector<8x32xf32> to vector<8x32xbf16>
    %cst_23 = arith.constant dense<0.000000e+00> : vector<8x32xf32>
    %66 = tpu.matmul %65, %9, %cst_23 {dimension_numbers = #tpu.dot_dimension_numbers<[1], [0], [0], [1], [0, 0, 1, 1], [], []>} : vector<8x32xbf16>, vector<32x32xbf16>, vector<8x32xf32> -> vector<8x32xf32>
    %67 = vector.extract_strided_slice %7 {offsets = [24, 0], sizes = [8, 32], strides = [1, 1]} : vector<64x32xf32> to vector<8x32xf32>
    %68 = arith.addf %67, %66 : vector<8x32xf32>
    %69 = math.tanh %68 : vector<8x32xf32>
    %c24 = arith.constant 24 : index
    %c0_24 = arith.constant 0 : index
    %70 = vector.load %arg8[%c24, %c0_24] : memref<64x32xf32, #tpu.memory_space<vmem>>, vector<8x32xf32>
    tpu.vector_store %arg8[%c24, %c0_24], %69 {strides = array<i32>} : memref<64x32xf32, #tpu.memory_space<vmem>>, vector<8x32xf32>,
    %71 = arith.truncf %69 : vector<8x32xf32> to vector<8x32xbf16>
    %cst_25 = arith.constant dense<0.000000e+00> : vector<8x32xf32>
    %72 = tpu.matmul %71, %9, %cst_25 {dimension_numbers = #tpu.dot_dimension_numbers<[1], [0], [0], [1], [0, 0, 1, 1], [], []>} : vector<8x32xbf16>, vector<32x32xbf16>, vector<8x32xf32> -> vector<8x32xf32>
    %73 = vector.extract_strided_slice %7 {offsets = [32, 0], sizes = [8, 32], strides = [1, 1]} : vector<64x32xf32> to vector<8x32xf32>
    %74 = arith.addf %73, %72 : vector<8x32xf32>
    %75 = math.tanh %74 : vector<8x32xf32>
    %c32 = arith.constant 32 : index
    %c0_26 = arith.constant 0 : index
    %76 = vector.load %arg8[%c32, %c0_26] : memref<64x32xf32, #tpu.memory_space<vmem>>, vector<8x32xf32>
    tpu.vector_store %arg8[%c32, %c0_26], %75 {strides = array<i32>} : memref<64x32xf32, #tpu.memory_space<vmem>>, vector<8x32xf32>,
    %77 = arith.truncf %75 : vector<8x32xf32> to vector<8x32xbf16>
    %cst_27 = arith.constant dense<0.000000e+00> : vector<8x32xf32>
    %78 = tpu.matmul %77, %9, %cst_27 {dimension_numbers = #tpu.dot_dimension_numbers<[1], [0], [0], [1], [0, 0, 1, 1], [], []>} : vector<8x32xbf16>, vector<32x32xbf16>, vector<8x32xf32> -> vector<8x32xf32>
    %79 = vector.extract_strided_slice %7 {offsets = [40, 0], sizes = [8, 32], strides = [1, 1]} : vector<64x32xf32> to vector<8x32xf32>
    %80 = arith.addf %79, %78 : vector<8x32xf32>
    %81 = math.tanh %80 : vector<8x32xf32>
    %c40 = arith.constant 40 : index
    %c0_28 = arith.constant 0 : index
    %82 = vector.load %arg8[%c40, %c0_28] : memref<64x32xf32, #tpu.memory_space<vmem>>, vector<8x32xf32>
    tpu.vector_store %arg8[%c40, %c0_28], %81 {strides = array<i32>} : memref<64x32xf32, #tpu.memory_space<vmem>>, vector<8x32xf32>,
    %83 = arith.truncf %81 : vector<8x32xf32> to vector<8x32xbf16>
    %cst_29 = arith.constant dense<0.000000e+00> : vector<8x32xf32>
    %84 = tpu.matmul %83, %9, %cst_29 {dimension_numbers = #tpu.dot_dimension_numbers<[1], [0], [0], [1], [0, 0, 1, 1], [], []>} : vector<8x32xbf16>, vector<32x32xbf16>, vector<8x32xf32> -> vector<8x32xf32>
    %85 = vector.extract_strided_slice %7 {offsets = [48, 0], sizes = [8, 32], strides = [1, 1]} : vector<64x32xf32> to vector<8x32xf32>
    %86 = arith.addf %85, %84 : vector<8x32xf32>
    %87 = math.tanh %86 : vector<8x32xf32>
    %c48 = arith.constant 48 : index
    %c0_30 = arith.constant 0 : index
    %88 = vector.load %arg8[%c48, %c0_30] : memref<64x32xf32, #tpu.memory_space<vmem>>, vector<8x32xf32>
    tpu.vector_store %arg8[%c48, %c0_30], %87 {strides = array<i32>} : memref<64x32xf32, #tpu.memory_space<vmem>>, vector<8x32xf32>,
    %89 = arith.truncf %87 : vector<8x32xf32> to vector<8x32xbf16>
    %cst_31 = arith.constant dense<0.000000e+00> : vector<8x32xf32>
    %90 = tpu.matmul %89, %9, %cst_31 {dimension_numbers = #tpu.dot_dimension_numbers<[1], [0], [0], [1], [0, 0, 1, 1], [], []>} : vector<8x32xbf16>, vector<32x32xbf16>, vector<8x32xf32> -> vector<8x32xf32>
    %91 = vector.extract_strided_slice %7 {offsets = [56, 0], sizes = [8, 32], strides = [1, 1]} : vector<64x32xf32> to vector<8x32xf32>
    %92 = arith.addf %91, %90 : vector<8x32xf32>
    %93 = math.tanh %92 : vector<8x32xf32>
    %c56 = arith.constant 56 : index
    %c0_32 = arith.constant 0 : index
    %94 = vector.load %arg8[%c56, %c0_32] : memref<64x32xf32, #tpu.memory_space<vmem>>, vector<8x32xf32>
    tpu.vector_store %arg8[%c56, %c0_32], %93 {strides = array<i32>} : memref<64x32xf32, #tpu.memory_space<vmem>>, vector<8x32xf32>,
    %c0_33 = arith.constant 0 : index
    %c0_34 = arith.constant 0 : index
    %95 = vector.load %arg8[%c0_33, %c0_34] : memref<64x32xf32, #tpu.memory_space<vmem>>, vector<64x32xf32>
    %96 = arith.truncf %95 : vector<64x32xf32> to vector<64x32xbf16>
    %c0_35 = arith.constant 0 : index
    %c0_36 = arith.constant 0 : index
    %97 = vector.load %arg5[%c0_35, %c0_36] : memref<32x1xbf16, #tpu.memory_space<vmem>>, vector<32x1xbf16>
    %cst_37 = arith.constant dense<0.000000e+00> : vector<64x1xf32>
    %98 = tpu.matmul %96, %97, %cst_37 {dimension_numbers = #tpu.dot_dimension_numbers<[1], [0], [0], [1], [0, 0, 1, 1], [], []>} : vector<64x32xbf16>, vector<32x1xbf16>, vector<64x1xf32> -> vector<64x1xf32>
    %c0_38 = arith.constant 0 : index
    %c0_39 = arith.constant 0 : index
    %99 = memref.load %arg6[%c0_38, %c0_39] : memref<1x1xf32, #tpu.memory_space<smem>>
    %100 = vector.broadcast %99 : f32 to vector<64x1xf32>
    %101 = arith.addf %98, %100 : vector<64x1xf32>
    %c0_40 = arith.constant 0 : index
    %c0_41 = arith.constant 0 : index
    %102 = vector.load %arg7[%c0_40, %c0_41] : memref<64x1xf32, #tpu.memory_space<vmem>>, vector<64x1xf32>
    tpu.vector_store %arg7[%c0_40, %c0_41], %101 {strides = array<i32>} : memref<64x1xf32, #tpu.memory_space<vmem>>, vector<64x1xf32>,
    return
  }
}

</mosaic_0001>

<bundles_post_ra>
// kernel: tpu_custom_call.1
= control target key start
LH: loop header
LB: loop body
LE: loop exit
PB: predicated region body
PF: predicated region fallthrough
CT: control target
= control target key end

     0   :  { %vm71_vm0 = vcmask 130048   ;;  %v1366_v3 = vmov 0.0   ;;  %vm1367_vm1 = vmmov 0   ;;  %vm171_vm2 = vcmask 261120   ;;  %s1369_s17 = smov 96   ;;  %s1697_s1 = inlined_call_operand.vmem [shape: bf16[16,64], index: 1, kind: input, shape index: {}]   ;;  %s1698_s0 = inlined_call_operand.vmem [shape: bf16[64,16], index: 0, kind: input, shape index: {}]   ;;  %s1699_s3 = inlined_call_operand.vmem [shape: bf16[32,32], index: 3, kind: input, shape index: {}]   ;;  %s1700_s2 = inlined_call_operand.vmem [shape: f32[1,64], index: 2, kind: input, shape index: {}]   ;;  %s1701_s4 = inlined_call_operand.vmem [shape: bf16[32,32], index: 4, kind: input, shape index: {}]   ;;  %s1702_s5 = inlined_call_operand.vmem [shape: bf16[32,1], index: 5, kind: input, shape index: {}]   ;;  %s1703_s6 = inlined_call_operand.<no memory space> [shape: f32[1,1], index: 6, kind: input, shape index: {}]   ;;  %s1704_s7 = inlined_call_operand.vmem [shape: f32[64,1], index: 7, kind: output, shape index: {}]  }
   0x1   :  { %v1323_v0 = vld [vmem:[%s1697_s1] sm:$0xff]   ;;  %v1325_v2 = vld [vmem:[%s1698_s0 + $0x8] sm:$0xff]   ;;  %1195 = vmatprep.subr.bf16.mxu1 %v1366_v3  ;;  %v1327_v4 = vld [vmem:[%s1698_s0 + $0x10] sm:$0xff]   ;;  %1199 = vmatprep.mubr.msk.bf16.mxu1 %vm1367_vm1, %v1366_v3  ;;  %vm1073_vm3 = vcmask 7168  }
   0x2   :  { %v1324_v1 = vld [vmem:[%s1698_s0] sm:$0xff]   ;;  %1177 = vmatprep.subr.bf16.mxu0 %v1323_v0  ;;  %v1328_v5 = vld [vmem:[%s1698_s0 + $0x18] sm:$0xff]   ;;  %v1439_v7 = vld [vmem:[%s1699_s3 + $0x8] sm:$0xff]  }
   0x3   :  { %1178 = vmatpush3.bf16.msra.mxu0 %v1323_v0  ;;  %1179 = vmatprep.mubr.msk.bf16.mxu0 %vm71_vm0, %v1324_v1  ;;  %v1430_v6 = vld [vmem:[%s1699_s3] sm:$0xff]  }
   0x4   :  { %1187 = vmatprep.subr.bf16.mxu0 %v1366_v3  ;;  %1196 = vmatpush3.bf16.msra.mxu1 %v1430_v6  ;;  %v1452_v8 = vld [vmem:[%s1700_s2] ss:$0 sm:$0xff] }
   0x5   :  { %1197 = vmatprep.subr.bf16.mxu1 %v1366_v3 }
   0x6   :  { %1180 = vmatmul.mubr.msk.bf16.vlgmr.msra.gmra.mrb[0].mxu0 %vm71_vm0, %v1325_v2 }
   0x7   :  { %1183 = vmatprep.mubr.msk.bf16.mxu0 %vm71_vm0, %v1327_v4  ;;  %1188 = vmatpush3.bf16.msra.mxu0 %v1430_v6 }
   0x8   :  { %1189 = vmatprep.subr.bf16.mxu0 %v1366_v3  ;;  %1198 = vmatpush3.bf16.msra.mxu1 %v1439_v7 }
   0x9   :  { %1211 = vmatprep.subr.bf16.mxu1 %v1366_v3 }
   0xb   :  { %1190 = vmatpush3.bf16.msra.mxu0 %v1439_v7 }
   0xc   :  { %1203 = vmatprep.subr.bf16.mxu0 %v1366_v3 }
   0xe   :  { %1184 = vmatmul.mubr.msk.bf16.gmra.mrb[4].mxu0 %vm71_vm0, %v1328_v5  ;;  %v1531_v5 = vld [vmem:[%s1701_s4] sm:$0xff]  }
   0xf   :  { %1191 = vmatprep.mubr.msk.bf16.mxu0 %vm1367_vm1, %v1366_v3 }
  0xd9   :  { %v1181_v9 = vpop.f32.mrb[0].mxu0 }
  0xda   :  { %v118_v10 = vpop.f32.mrb[1].mxu0  ;;  %v1481_v28 = vadd.f32 %v1181_v9, %v1452_v8 }
  0xdb   :  { %v1455_v11 = vadd.f32 %v1452_v8, %v118_v10  ;;  %v1182_v12 = vpop.f32.mrb[2].mxu0 }
  0xdc   :  { %v121_v13 = vpop.f32.mrb[3].mxu0  ;;  %v1492_v36 = vadd.f32 %v1182_v12, %v1452_v8 }
  0xdd   :  { %1334 = vtanh.f32 %v1455_v11  ;;  %v1470_v20 = vadd.f32 %v1452_v8, %v121_v13 }
  0xe1   :  { %v1465_v16 = vpop.f32.mrb[4].mxu0 }
  0xe2   :  { %v134_v17 = vpop.f32.mrb[5].mxu0  ;;  %v1522_v60 = vadd.f32 %v1465_v16, %v1452_v8 }
  0xe3   :  { %v1467_v18 = vpop.f32.mrb[6].mxu0  ;;  %v1503_v44 = vadd.f32 %v1452_v8, %v134_v17 }
  0xe4   :  { %v137_v19 = vpop.f32.mrb[7].mxu0 }
  0xe5   :  { %v1514_v52 = vadd.f32 %v1452_v8, %v137_v19 }
  0xe7   :  { %v1335_v14 = vpop.eup %1334 }
  0xe8   :  { %v158_v15 = vpack.c.bf16 %v1335_v14, %v1335_v14 }
  0xea   :  { %1192 = vmatmul.mubr.msk.bf16.vlgmr.msra.gmra.mrb[8].mxu0 %vm171_vm2, %v158_v15 }
  0xeb   :  { %1204 = vmatpush3.bf16.msra.mxu0 %v1430_v6  ;;  %1207 = vmatprep.mubr.msk.bf16.mxu0 %vm1367_vm1, %v1366_v3 }
  0xec   :  { %1205 = vmatprep.subr.bf16.mxu0 %v1366_v3 }
  0xef   :  { %1206 = vmatpush3.bf16.msra.mxu0 %v1439_v7 }
  0xf0   :  { %1219 = vmatprep.subr.bf16.mxu0 %v1366_v3 }
 0x1bd   :  { %v209_v21 = vpop.f32.mrb[8].mxu0 }
 0x1be   :  { %v215_v22 = vadd.f32 %v209_v21, %v1470_v20  ;;  %v1193_v23 = vpop.f32.mrb[9].mxu0 }
 0x1bf   :  { %v212_v24 = vpop.f32.mrb[10].mxu0 }
 0x1c0   :  { %1336 = vtanh.f32 %v215_v22  ;;  %v1194_v25 = vpop.f32.mrb[11].mxu0 }
 0x1ca   :  { %v1337_v26 = vpop.eup %1336 }
 0x1cb   :  { %v217_v27 = vpack.c.bf16 %v1337_v26, %v1337_v26 }
 0x1cd   :  { %1200 = vmatmul.mubr.msk.bf16.vlgmr.msra.gmra.mrb[0].mxu1 %vm171_vm2, %v217_v27 }
 0x1ce   :  { %1212 = vmatpush3.bf16.msra.mxu1 %v1430_v6  ;;  %1215 = vmatprep.mubr.msk.bf16.mxu1 %vm1367_vm1, %v1366_v3 }
 0x1cf   :  { %1213 = vmatprep.subr.bf16.mxu1 %v1366_v3 }
 0x1d2   :  { %1214 = vmatpush3.bf16.msra.mxu1 %v1439_v7 }
 0x1d3   :  { %1227 = vmatprep.subr.bf16.mxu1 %v1366_v3 }
 0x2a0   :  { %v255_v29 = vpop.f32.mrb[0].mxu1 }
 0x2a1   :  { %v261_v30 = vadd.f32 %v255_v29, %v1481_v28  ;;  %v1201_v31 = vpop.f32.mrb[1].mxu1 }
 0x2a2   :  { %v258_v32 = vpop.f32.mrb[2].mxu1 }
 0x2a3   :  { %1338 = vtanh.f32 %v261_v30  ;;  %v1202_v33 = vpop.f32.mrb[3].mxu1 }
 0x2ad   :  { %v1339_v34 = vpop.eup %1338 }
 0x2ae   :  { %v263_v35 = vpack.c.bf16 %v1339_v34, %v1339_v34 }
 0x2b0   :  { %1208 = vmatmul.mubr.msk.bf16.vlgmr.msra.gmra.mrb[12].mxu0 %vm171_vm2, %v263_v35 }
 0x2b1   :  { %1220 = vmatpush3.bf16.msra.mxu0 %v1430_v6  ;;  %1223 = vmatprep.mubr.msk.bf16.mxu0 %vm1367_vm1, %v1366_v3 }
 0x2b2   :  { %1221 = vmatprep.subr.bf16.mxu0 %v1366_v3 }
 0x2b5   :  { %1222 = vmatpush3.bf16.msra.mxu0 %v1439_v7 }
 0x2b6   :  { %1235 = vmatprep.subr.bf16.mxu0 %v1366_v3 }
 0x383   :  { %v301_v37 = vpop.f32.mrb[12].mxu0 }
 0x384   :  { %v307_v38 = vadd.f32 %v301_v37, %v1492_v36  ;;  %v1209_v39 = vpop.f32.mrb[13].mxu0 }
 0x385   :  { %v304_v40 = vpop.f32.mrb[14].mxu0 }
 0x386   :  { %1340 = vtanh.f32 %v307_v38  ;;  %v1210_v41 = vpop.f32.mrb[15].mxu0 }
 0x390   :  { %v1341_v42 = vpop.eup %1340 }
 0x391   :  { %v309_v43 = vpack.c.bf16 %v1341_v42, %v1341_v42 }
 0x393   :  { %1216 = vmatmul.mubr.msk.bf16.vlgmr.msra.gmra.mrb[4].mxu1 %vm171_vm2, %v309_v43 }
 0x394   :  { %1228 = vmatpush3.bf16.msra.mxu1 %v1430_v6  ;;  %1231 = vmatprep.mubr.msk.bf16.mxu1 %vm1367_vm1, %v1366_v3 }
 0x395   :  { %1229 = vmatprep.subr.bf16.mxu1 %v1366_v3 }
 0x398   :  { %1230 = vmatpush3.bf16.msra.mxu1 %v1439_v7 }
 0x399   :  { %1243 = vmatprep.subr.bf16.mxu1 %v1366_v3 }
 0x466   :  { %v347_v45 = vpop.f32.mrb[4].mxu1 }
 0x467   :  { %v353_v46 = vadd.f32 %v347_v45, %v1503_v44  ;;  %v1217_v47 = vpop.f32.mrb[5].mxu1 }
 0x468   :  { %v350_v48 = vpop.f32.mrb[6].mxu1 }
 0x469   :  { %1342 = vtanh.f32 %v353_v46  ;;  %v1218_v49 = vpop.f32.mrb[7].mxu1 }
 0x473   :  { %v1343_v50 = vpop.eup %1342 }
 0x474   :  { %v355_v51 = vpack.c.bf16 %v1343_v50, %v1343_v50 }
 0x476   :  { %1224 = vmatmul.mubr.msk.bf16.vlgmr.msra.gmra.mrb[16].mxu0 %vm171_vm2, %v355_v51 }
 0x477   :  { %1236 = vmatpush3.bf16.msra.mxu0 %v1430_v6  ;;  %1239 = vmatprep.mubr.msk.bf16.mxu0 %vm1367_vm1, %v1366_v3  ;;  %v1540_v6 = vld [vmem:[%s1701_s4 + $0x8] sm:$0xff]   ;;  %s1368_s4 = smov 32  }
 0x478   :  { %1237 = vmatprep.subr.bf16.mxu0 %v1366_v3 }
 0x47b   :  { %1238 = vmatpush3.bf16.msra.mxu0 %v1439_v7  ;;  %v1548_v7 = vadd.f32 %v1467_v18, %v1452_v8 }
 0x47c   :  { %1251 = vmatprep.subr.bf16.mxu0 %v1366_v3 }
 0x549   :  { %v393_v53 = vpop.f32.mrb[16].mxu0 }
 0x54a   :  { %v399_v54 = vadd.f32 %v393_v53, %v1514_v52  ;;  %v1225_v55 = vpop.f32.mrb[17].mxu0 }
 0x54b   :  { %v396_v56 = vpop.f32.mrb[18].mxu0 }
 0x54c   :  { %1344 = vtanh.f32 %v399_v54  ;;  %v1226_v57 = vpop.f32.mrb[19].mxu0 }
 0x556   :  { %v1345_v58 = vpop.eup %1344 }
 0x557   :  { %v401_v59 = vpack.c.bf16 %v1345_v58, %v1345_v58 }
 0x559   :  { %1232 = vmatmul.mubr.msk.bf16.vlgmr.msra.gmra.mrb[8].mxu1 %vm171_vm2, %v401_v59 }
 0x55a   :  { %1247 = vmatprep.mubr.msk.bf16.mxu1 %vm1367_vm1, %v1366_v3  ;;  %1244 = vmatpush3.bf16.msra.mxu1 %v1531_v5 }
 0x55b   :  { %1245 = vmatprep.subr.bf16.mxu1 %v1366_v3 }
 0x55e   :  { %1246 = vmatpush3.bf16.msra.mxu1 %v1540_v6 }
 0x55f   :  { %1259 = vmatprep.subr.bf16.mxu1 %v1366_v3 }
 0x62c   :  { %v439_v61 = vpop.f32.mrb[8].mxu1 }
 0x62d   :  { %v445_v62 = vadd.f32 %v439_v61, %v1522_v60  ;;  %v1233_v63 = vpop.f32.mrb[9].mxu1 }
 0x62e   :  { %v442_v0 = vpop.f32.mrb[10].mxu1 }
 0x62f   :  { %1346 = vtanh.f32 %v445_v62  ;;  %v1234_v1 = vpop.f32.mrb[11].mxu1 }
 0x639   :  { %v1347_v2 = vpop.eup %1346 }
 0x63a   :  { %v447_v4 = vpack.c.bf16 %v1347_v2, %v1347_v2 }
 0x63c   :  { %1240 = vmatmul.mubr.msk.bf16.vlgmr.msra.gmra.mrb[20].mxu0 %vm171_vm2, %v447_v4 }
 0x63d   :  { %1255 = vmatprep.mubr.msk.bf16.mxu0 %vm1367_vm1, %v1366_v3  ;;  %1252 = vmatpush3.bf16.msra.mxu0 %v1531_v5 }
 0x63e   :  { %1253 = vmatprep.subr.bf16.mxu0 %v1366_v3 }
 0x641   :  { %1254 = vmatpush3.bf16.msra.mxu0 %v1540_v6 }
 0x642   :  { %1267 = vmatprep.subr.bf16.mxu0 %v1366_v3 }
 0x70f   :  { %v485_v9 = vpop.f32.mrb[20].mxu0 }
 0x710   :  { %v491_v10 = vadd.f32 %v485_v9, %v1548_v7  ;;  %v1241_v12 = vpop.f32.mrb[21].mxu0 }
 0x711   :  { %v488_v13 = vpop.f32.mrb[22].mxu0 }
 0x712   :  { %1348 = vtanh.f32 %v491_v10  ;;  %v1242_v14 = vpop.f32.mrb[23].mxu0 }
 0x71c   :  { %v1349_v15 = vpop.eup %1348 }
 0x71d   :  { %v493_v16 = vpack.c.bf16 %v1349_v15, %v1349_v15 }
 0x71f   :  { %1248 = vmatmul.mubr.msk.bf16.vlgmr.msra.gmra.mrb[12].mxu1 %vm171_vm2, %v493_v16 }
 0x720   :  { %1260 = vmatpush3.bf16.msra.mxu1 %v1531_v5  ;;  %1263 = vmatprep.mubr.msk.bf16.mxu1 %vm1367_vm1, %v1366_v3 }
 0x721   :  { %1261 = vmatprep.subr.bf16.mxu1 %v1366_v3 }
 0x724   :  { %1262 = vmatpush3.bf16.msra.mxu1 %v1540_v6 }
 0x725   :  { %1275 = vmatprep.subr.bf16.mxu1 %v1366_v3 }
 0x7f2   :  { %v543_v8 = vpop.f32.mrb[12].mxu1 }
 0x7f3   :  { %550 = vrot.lane.b32.xlu0 %v543_v8, %s1368_s4  ;;  %v1249_v17 = vpop.f32.mrb[13].mxu1 }
 0x7f4   :  { %v546_v18 = vpop.f32.mrb[14].mxu1 }
 0x7f5   :  { %v1250_v19 = vpop.f32.mrb[15].mxu1 }
 0x865   :  { %v551_v21 = vpop.permute.xlu0 %550 }
 0x866   :  { %v553_v22 = vadd.f32 %v551_v21, %v1455_v11  ;;  %v1332_v21 = vld [vmem:[%s1702_s5] sm:$0xff]  }
 0x868   :  { %1350 = vtanh.f32 %v553_v22 }
 0x872   :  { %v1560_v23 = vpop.eup %1350 }
 0x873   :  { %v560_v24 = vpack.c.bf16 %v1560_v23, %v1560_v23 }
 0x875   :  { %562 = vrot.lane.b32.xlu0 %v560_v24, %s1369_s17 }
 0x8e7   :  { %v563_v25 = vpop.permute.xlu0 %562 }
 0x8e8   :  { %1256 = vmatmul.mubr.msk.bf16.vlgmr.msra.gmra.mrb[24].mxu0 %vm171_vm2, %v563_v25 }
 0x8e9   :  { %1268 = vmatpush3.bf16.msra.mxu0 %v1531_v5  ;;  %1271 = vmatprep.mubr.msk.bf16.mxu0 %vm1367_vm1, %v1366_v3 }
 0x8ea   :  { %1269 = vmatprep.subr.bf16.mxu0 %v1366_v3 }
 0x8ed   :  { %1270 = vmatpush3.bf16.msra.mxu0 %v1540_v6 }
 0x8ee   :  { %1283 = vmatprep.subr.bf16.mxu0 %v1366_v3 }
 0x9bb   :  { %v601_v11 = vpop.f32.mrb[24].mxu0 }
 0x9bc   :  { %608 = vrot.lane.b32.xlu1 %v601_v11, %s1368_s4  ;;  %v1257_v26 = vpop.f32.mrb[25].mxu0 }
 0x9bd   :  { %v604_v27 = vpop.f32.mrb[26].mxu0 }
 0x9be   :  { %v1258_v29 = vpop.f32.mrb[27].mxu0 }
 0xa2e   :  { %v609_v30 = vpop.permute.xlu1 %608 }
 0xa2f   :  { %v611_v31 = vadd.f32 %v609_v30, %v1470_v20 }
 0xa31   :  { %1352 = vtanh.f32 %v611_v31 }
 0xa3b   :  { %v1574_v32 = vpop.eup %1352 }
 0xa3c   :  { %v618_v33 = vpack.c.bf16 %v1574_v32, %v1574_v32 }
 0xa3e   :  { %620 = vrot.lane.b32.xlu1 %v618_v33, %s1369_s17 }
 0xab0   :  { %v621_v34 = vpop.permute.xlu1 %620 }
 0xab1   :  { %1264 = vmatmul.mubr.msk.bf16.vlgmr.msra.gmra.mrb[16].mxu1 %vm171_vm2, %v621_v34 }
 0xab2   :  { %1276 = vmatpush3.bf16.msra.mxu1 %v1531_v5  ;;  %1279 = vmatprep.mubr.msk.bf16.mxu1 %vm1367_vm1, %v1366_v3 }
 0xab3   :  { %1277 = vmatprep.subr.bf16.mxu1 %v1366_v3 }
 0xab6   :  { %1278 = vmatpush3.bf16.msra.mxu1 %v1540_v6 }
 0xab7   :  { %1291 = vmatprep.subr.bf16.mxu1 %v1366_v3 }
 0xb84   :  { %v659_v20 = vpop.f32.mrb[16].mxu1 }
 0xb85   :  { %666 = vrot.lane.b32.xlu0 %v659_v20, %s1368_s4  ;;  %v1265_v35 = vpop.f32.mrb[17].mxu1 }
 0xb86   :  { %v662_v37 = vpop.f32.mrb[18].mxu1 }
 0xb87   :  { %v1266_v38 = vpop.f32.mrb[19].mxu1 }
 0xbf7   :  { %v667_v39 = vpop.permute.xlu0 %666 }
 0xbf8   :  { %v669_v40 = vadd.f32 %v667_v39, %v1481_v28 }
 0xbfa   :  { %1354 = vtanh.f32 %v669_v40 }
 0xc04   :  { %v1588_v41 = vpop.eup %1354 }
 0xc05   :  { %v676_v42 = vpack.c.bf16 %v1588_v41, %v1588_v41 }
 0xc07   :  { %678 = vrot.lane.b32.xlu1 %v676_v42, %s1369_s17 }
 0xc79   :  { %v679_v43 = vpop.permute.xlu1 %678 }
 0xc7a   :  { %1272 = vmatmul.mubr.msk.bf16.vlgmr.msra.gmra.mrb[28].mxu0 %vm171_vm2, %v679_v43 }
 0xc7b   :  { %1284 = vmatpush3.bf16.msra.mxu0 %v1531_v5  ;;  %1287 = vmatprep.mubr.msk.bf16.mxu0 %vm1367_vm1, %v1366_v3 }
 0xc7c   :  { %1285 = vmatprep.subr.bf16.mxu0 %v1366_v3 }
 0xc7f   :  { %1286 = vmatpush3.bf16.msra.mxu0 %v1540_v6 }
 0xc80   :  { %1299 = vmatprep.subr.bf16.mxu0 %v1366_v3 }
 0xd4d   :  { %v717_v28 = vpop.f32.mrb[28].mxu0 }
 0xd4e   :  { %724 = vrot.lane.b32.xlu0 %v717_v28, %s1368_s4  ;;  %v1273_v45 = vpop.f32.mrb[29].mxu0 }
 0xd4f   :  { %v720_v46 = vpop.f32.mrb[30].mxu0  ;;  %v983_v45 = vstv %s1703_s6 }
 0xd50   :  { %v1274_v47 = vpop.f32.mrb[31].mxu0 }
 0xdc0   :  { %v725_v48 = vpop.permute.xlu0 %724 }
 0xdc1   :  { %v727_v49 = vadd.f32 %v725_v48, %v1492_v36 }
 0xdc3   :  { %1356 = vtanh.f32 %v727_v49 }
 0xdcd   :  { %v1602_v50 = vpop.eup %1356 }
 0xdce   :  { %v734_v51 = vpack.c.bf16 %v1602_v50, %v1602_v50 }
 0xdd0   :  { %736 = vrot.lane.b32.xlu1 %v734_v51, %s1369_s17 }
 0xe42   :  { %v737_v53 = vpop.permute.xlu1 %736 }
 0xe43   :  { %1280 = vmatmul.mubr.msk.bf16.vlgmr.msra.gmra.mrb[20].mxu1 %vm171_vm2, %v737_v53 }
 0xe44   :  { %1292 = vmatpush3.bf16.msra.mxu1 %v1531_v5  ;;  %1295 = vmatprep.mubr.msk.bf16.mxu1 %vm1367_vm1, %v1366_v3 }
 0xe45   :  { %1293 = vmatprep.subr.bf16.mxu1 %v1366_v3 }
 0xe48   :  { %1294 = vmatpush3.bf16.msra.mxu1 %v1540_v6 }
 0xe49   :  { %1307 = vmatprep.subr.bf16.mxu1 %v1332_v21 }
 0xf16   :  { %v775_v36 = vpop.f32.mrb[20].mxu1 }
 0xf17   :  { %782 = vrot.lane.b32.xlu0 %v775_v36, %s1368_s4  ;;  %v1281_v54 = vpop.f32.mrb[21].mxu1 }
 0xf18   :  { %v778_v55 = vpop.f32.mrb[22].mxu1 }
 0xf19   :  { %v1282_v56 = vpop.f32.mrb[23].mxu1 }
 0xf89   :  { %v783_v57 = vpop.permute.xlu0 %782 }
 0xf8a   :  { %v785_v58 = vadd.f32 %v783_v57, %v1503_v44 }
 0xf8c   :  { %1358 = vtanh.f32 %v785_v58 }
 0xf96   :  { %v1359_v59 = vpop.eup %1358 }
 0xf97   :  { %v792_v61 = vpack.c.bf16 %v1359_v59, %v1359_v59 }
 0xf99   :  { %794 = vrot.lane.b32.xlu1 %v792_v61, %s1369_s17 }
0x100b   :  { %v795_v62 = vpop.permute.xlu1 %794 }
0x100c   :  { %1288 = vmatmul.mubr.msk.bf16.vlgmr.msra.gmra.mrb[32].mxu0 %vm171_vm2, %v795_v62 }
0x100d   :  { %1300 = vmatpush3.bf16.msra.mxu0 %v1531_v5  ;;  %1303 = vmatprep.mubr.msk.bf16.mxu0 %vm1367_vm1, %v1366_v3 }
0x100e   :  { %1301 = vmatprep.subr.bf16.mxu0 %v1366_v3 }
0x1011   :  { %1302 = vmatpush3.bf16.msra.mxu0 %v1540_v6 }
0x10df   :  { %v833_v63 = vpop.f32.mrb[32].mxu0 }
0x10e0   :  { %840 = vrot.lane.b32.xlu0 %v833_v63, %s1368_s4  ;;  %v1289_v44 = vpop.f32.mrb[33].mxu0 }
0x10e1   :  { %v836_v0 = vpop.f32.mrb[34].mxu0 }
0x10e2   :  { %v1290_v1 = vpop.f32.mrb[35].mxu0 }
0x1152   :  { %v841_v2 = vpop.permute.xlu0 %840 }
0x1153   :  { %v843_v4 = vadd.f32 %v841_v2, %v1514_v52 }
0x1155   :  { %1360 = vtanh.f32 %v843_v4 }
0x115f   :  { %v1361_v9 = vpop.eup %1360 }
0x1160   :  { %v850_v10 = vpack.c.bf16 %v1361_v9, %v1361_v9 }
0x1162   :  { %852 = vrot.lane.b32.xlu1 %v850_v10, %s1369_s17 }
0x11d4   :  { %v853_v5 = vpop.permute.xlu1 %852 }
0x11d5   :  { %1296 = vmatmul.mubr.msk.bf16.vlgmr.msra.gmra.mrb[24].mxu1 %vm171_vm2, %v853_v5 }
0x11d6   :  { %1308 = vmatpush3.bf16.msra.mxu1 %v1332_v21 }
0x12a8   :  { %v891_v3 = vpop.f32.mrb[24].mxu1 }
0x12a9   :  { %898 = vrot.lane.b32.xlu0 %v891_v3, %s1368_s4  ;;  %v1297_v6 = vpop.f32.mrb[25].mxu1 }
0x12aa   :  { %v894_v12 = vpop.f32.mrb[26].mxu1 }
0x12ab   :  { %v1298_v13 = vpop.f32.mrb[27].mxu1 }
0x131b   :  { %v899_v14 = vpop.permute.xlu0 %898 }
0x131c   :  { %v901_v15 = vadd.f32 %v899_v14, %v1522_v60 }
0x131e   :  { %1362 = vtanh.f32 %v901_v15 }
0x1328   :  { %v1363_v16 = vpop.eup %1362 }
0x1329   :  { %v908_v52 = vpack.c.bf16 %v1363_v16, %v1363_v16 }
0x132b   :  { %910 = vrot.lane.b32.xlu1 %v908_v52, %s1369_s17 }
0x132f   :  { %556 = vrot.lane.b32.xlu1 %v1560_v23, %s1369_s17  ;;  %v1333_v23 = vld [vmem:[%s1702_s5 + $0x8] sm:$0xff]  }
0x1330   :  { %1309 = vmatprep.subr.bf16.mxu1 %v1333_v23 }
0x1331   :  { %1310 = vmatpush3.bf16.msra.mxu1 %v1333_v23 }
0x1333   :  { %672 = vrot.lane.b32.xlu1 %v1588_v41, %s1369_s17 }
0x1337   :  { %788 = vrot.lane.b32.xlu1 %v1359_v59, %s1369_s17 }
0x133b   :  { %904 = vrot.lane.b32.xlu1 %v1363_v16, %s1369_s17 }
0x139d   :  { %v911_v8 = vpop.permute.xlu1 %910 }
0x139e   :  { %1304 = vmatmul.mubr.msk.bf16.vlgmr.msra.gmra.mrb[36].mxu0 %vm171_vm2, %v911_v8 }
0x13a1   :  { %v557_v17 = vpop.permute.xlu1 %556 }
0x13a2   :  { %559 = vst.msk [vmem:[#allocation2] sm:$0xff] %vm171_vm2, %v557_v17 }
0x13a5   :  { %v673_v60 = vpop.permute.xlu1 %672 }
0x13a6   :  { %675 = vst.msk [vmem:[#allocation2 + $0x10] sm:$0xff] %vm171_vm2, %v673_v60 }
0x13a9   :  { %v789_v18 = vpop.permute.xlu1 %788  ;;  %v966_v33 = vld [vmem:[#allocation2] sm:$0xff] }
0x13aa   :  { %791 = vst.msk [vmem:[#allocation2 + $0x20] sm:$0xff] %vm171_vm2, %v789_v18 }
0x13ad   :  { %v905_v19 = vpop.permute.xlu1 %904  ;;  %v968_v35 = vld [vmem:[#allocation2 + $0x10] sm:$0xff] }
0x13ae   :  { %907 = vst.msk [vmem:[#allocation2 + $0x30] sm:$0xff] %vm171_vm2, %v905_v19 }
0x13b1   :  { %v970_v38 = vld [vmem:[#allocation2 + $0x20] sm:$0xff] }
0x13b5   :  { %v972_v42 = vld [vmem:[#allocation2 + $0x30] sm:$0xff] }
0x1471   :  { %v949_v22 = vpop.f32.mrb[36].mxu0 }
0x1472   :  { %956 = vrot.lane.b32.xlu0 %v949_v22, %s1368_s4  ;;  %v1305_v24 = vpop.f32.mrb[37].mxu0 }
0x1473   :  { %v952_v25 = vpop.f32.mrb[38].mxu0 }
0x1474   :  { %v1306_v11 = vpop.f32.mrb[39].mxu0 }
0x1476   :  { %614 = vrot.lane.b32.xlu0 %v1574_v32, %s1369_s17 }
0x147a   :  { %730 = vrot.lane.b32.xlu0 %v1602_v50, %s1369_s17 }
0x147e   :  { %846 = vrot.lane.b32.xlu0 %v1361_v9, %s1369_s17 }
0x14e4   :  { %v957_v26 = vpop.permute.xlu0 %956 }
0x14e5   :  { %v959_v27 = vadd.f32 %v957_v26, %v1548_v7 }
0x14e7   :  { %1364 = vtanh.f32 %v959_v27 }
0x14e8   :  { %v615_v29 = vpop.permute.xlu0 %614 }
0x14e9   :  { %617 = vst.msk [vmem:[#allocation2 + $0x8] sm:$0xff] %vm171_vm2, %v615_v29 }
0x14ec   :  { %v731_v30 = vpop.permute.xlu0 %730 }
0x14ed   :  { %733 = vst.msk [vmem:[#allocation2 + $0x18] sm:$0xff] %vm171_vm2, %v731_v30 }
0x14f0   :  { %v847_v31 = vpop.permute.xlu0 %846  ;;  %v967_v34 = vld [vmem:[#allocation2 + $0x8] sm:$0xff] }
0x14f1   :  { %v1365_v20 = vpop.eup %1364  ;;  %849 = vst.msk [vmem:[#allocation2 + $0x28] sm:$0xff] %vm171_vm2, %v847_v31  ;;  %v974_v32 = vpack.c.bf16 %v967_v34, %v966_v33 }
0x14f2   :  { %962 = vrot.lane.b32.xlu0 %v1365_v20, %s1369_s17 }
0x14f3   :  { %1311 = vmatprep.mubr.msk.bf16.mxu1 %vm171_vm2, %v974_v32 }
0x14f4   :  { %v969_v7 = vld [vmem:[#allocation2 + $0x18] sm:$0xff] }
0x14f5   :  { %v975_v37 = vpack.c.bf16 %v969_v7, %v968_v35 }
0x14f7   :  { %1312 = vmatmul.mubr.msk.bf16.vlgmr.msra.gmra.mrb[28].mxu1 %vm171_vm2, %v975_v37 }
0x14f8   :  { %v971_v39 = vld [vmem:[#allocation2 + $0x28] sm:$0xff] }
0x14f9   :  { %v976_v40 = vpack.c.bf16 %v971_v39, %v970_v38 }
0x14fb   :  { %1315 = vmatprep.mubr.msk.bf16.mxu1 %vm171_vm2, %v976_v40 }
0x1564   :  { %v963_v41 = vpop.permute.xlu0 %962 }
0x1565   :  { %965 = vst.msk [vmem:[#allocation2 + $0x38] sm:$0xff] %vm171_vm2, %v963_v41 }
0x156c   :  { %v973_v43 = vld [vmem:[#allocation2 + $0x38] sm:$0xff] }
0x156d   :  { %v977_v28 = vpack.c.bf16 %v973_v43, %v972_v42 }
0x156f   :  { %1316 = vmatmul.mubr.msk.bf16.gmra.mrb[32].mxu1 %vm171_vm2, %v977_v28 }
0x15ca   :  { %v1313_v46 = vpop.f32.mrb[28].mxu1 }
0x15cb   :  { %v1051_v47 = vadd.f32 %v1313_v46, %v983_v45  ;;  %v1042_v48 = vpop.f32.mrb[29].mxu1 }
0x15cc   :  { %v1043_v49 = vadd.f32 %v1042_v48, %v983_v45  ;;  %v1314_v50 = vpop.f32.mrb[30].mxu1 }
0x15cd   :  { %1076 = vst.msk [vmem:[%s1704_s7 + $0x10] sm:$0xff] %vm1073_vm3, %v1051_v47  ;;  %v1054_v51 = vadd.f32 %v1314_v50, %v983_v45  ;;  %v1045_v53 = vpop.f32.mrb[31].mxu1 }
0x15ce   :  { %1074 = vst.msk [vmem:[%s1704_s7] sm:$0xff] %vm1073_vm3, %v1043_v49  ;;  %v1046_v36 = vadd.f32 %v1045_v53, %v983_v45 }
0x15cf   :  { %1077 = vst.msk [vmem:[%s1704_s7 + $0x18] sm:$0xff] %vm1073_vm3, %v1054_v51 }
0x15d0   :  { %1075 = vst.msk [vmem:[%s1704_s7 + $0x8] sm:$0xff] %vm1073_vm3, %v1046_v36 }
0x1642   :  { %v1317_v54 = vpop.f32.mrb[32].mxu1 }
0x1643   :  { %v1067_v55 = vadd.f32 %v1317_v54, %v983_v45  ;;  %v1058_v56 = vpop.f32.mrb[33].mxu1 }
0x1644   :  { %v1059_v57 = vadd.f32 %v1058_v56, %v983_v45  ;;  %v1318_v58 = vpop.f32.mrb[34].mxu1 }
0x1645   :  { %1080 = vst.msk [vmem:[%s1704_s7 + $0x30] sm:$0xff] %vm1073_vm3, %v1067_v55  ;;  %v1070_v59 = vadd.f32 %v1318_v58, %v983_v45  ;;  %v1061_v61 = vpop.f32.mrb[35].mxu1 }
0x1646   :  { %1078 = vst.msk [vmem:[%s1704_s7 + $0x20] sm:$0xff] %vm1073_vm3, %v1059_v57  ;;  %v1062_v62 = vadd.f32 %v1061_v61, %v983_v45 }
0x1647   :  { %1081 = vst.msk [vmem:[%s1704_s7 + $0x38] sm:$0xff] %vm1073_vm3, %v1070_v59 }
0x1648   :  { %1079 = vst.msk [vmem:[%s1704_s7 + $0x28] sm:$0xff] %vm1073_vm3, %v1062_v62 }

</bundles_post_ra>
